<compile_context>
chip_gen: v5e
topology: v5e:2x2
jax: 0.10.0
libtpu: 0.0.40
codegen_flags: <defaults>
</compile_context>

<pallas_src>
import jax
import jax.numpy as jnp
from jax.experimental import pallas as pl
from jax.experimental.pallas import tpu as pltpu


def _round_up(x, m):
    return ((x + m - 1) // m) * m


def _make_att_fuse_kernel(num_layers):
    def kernel(b_ref, w_ref, *refs):
        # b_ref:      SMEM (1,)        -- Linear bias (f32)
        # w_ref:      VMEM (1, D)      -- Linear weight (out_features=1)
        # refs[:L]:   VMEM (tn, D)     -- per-layer feature tiles
        # refs[L]:    VMEM (tn, D)     -- output tile
        fts_refs = refs[:num_layers]
        out_ref = refs[num_layers]

        b = b_ref[0]
        w = w_ref[...].astype(jnp.float32)                                # (1, D)

        # Load each layer tile once; reuse for score pass and weighted sum.
        fts = [r[...].astype(jnp.float32) for r in fts_refs]              # L x (tn, D)

        # Per-layer score projection (lane reduce on the XLU, VPU mul).
        scores = [jnp.sum(f * w, axis=-1, keepdims=True) + b for f in fts]  # L x (tn, 1)

        # Numerically stable softmax over the layer axis: pure elementwise ops
        # on L narrow (tn, 1) columns -- no cross-row data movement.
        m = scores[0]
        for s in scores[1:]:
            m = jnp.maximum(m, s)
        exps = [jnp.exp(s - m) for s in scores]
        denom = exps[0]
        for e in exps[1:]:
            denom = denom + e
        inv = pl.reciprocal(denom, approx=False)                          # (tn, 1)

        # Weighted layer sum in f32; (tn, 1) weights broadcast over lanes.
        acc = (exps[0] * inv) * fts[0]
        for l in range(1, num_layers):
            acc = acc + (exps[l] * inv) * fts[l]
        out_ref[...] = acc.astype(out_ref.dtype)

    return kernel


def lf_op_att(fts_list, weight, bias, *, tile_n=None,
              vmem_block_budget_bytes=16 * 1024 * 1024, max_tile_n=1024):
    """Attention layer-fusion.

    fts_list: list (len = layer_num) of [N, D] arrays (same shape/dtype).
    weight:   [1, D]  (nn.Linear(hidden_dim, 1).weight)
    bias:     [1]     (nn.Linear(hidden_dim, 1).bias)
    returns:  [N, D]
    """
    num_layers = len(fts_list)
    n, d = fts_list[0].shape
    dtype = fts_list[0].dtype
    itemsize = jnp.dtype(dtype).itemsize

    # dtype-aware sublane tile: 8 rows for f32, 16 for bf16, 32 for int8/fp8.
    sub = {1: 32, 2: 16, 4: 8}.get(itemsize, 8)

    if tile_n is None:
        # Double-buffered per-row bytes: L input blocks + 1 output block.
        per_row = 2 * (num_layers + 1) * d * itemsize
        budget_tile = max(sub, vmem_block_budget_bytes // max(per_row, 1))
        tile_n = min(max_tile_n, budget_tile)
        # v7x: ensure enough grid steps for 2 TensorCores + pipeline overlap,
        # but never shrink tiles below ~256 rows to get there.
        target_steps = 8
        if n >= target_steps * 256:
            tile_n = min(tile_n, _round_up(-(-n // target_steps), sub))

    tile_n = int(tile_n)
    tile_n = max(sub, (tile_n // sub) * sub)
    if tile_n >= n:
        tile_n = n  # full-extent block: always a legal block shape, grid of 1.

    grid = (pl.cdiv(n, tile_n),)

    bias = jnp.asarray(bias, jnp.float32)  # scalar path lives in SMEM as f32

    fts_spec = pl.BlockSpec((tile_n, d), lambda i: (i, 0))
    in_specs = (
        [pl.BlockSpec(memory_space=pltpu.MemorySpace.SMEM),  # bias (scalar)
         pl.BlockSpec((1, d), lambda i: (0, 0))]             # weight, resident
        + [fts_spec] * num_layers                            # per-layer features
    )

    out = pl.pallas_call(
        _make_att_fuse_kernel(num_layers),
        out_shape=jax.ShapeDtypeStruct((n, d), dtype),
        grid=grid,
        in_specs=in_specs,
        out_specs=pl.BlockSpec((tile_n, d), lambda i: (i, 0)),
        compiler_params=pltpu.CompilerParams(
            dimension_semantics=("parallel",),
            # Above v5e/v7x scoped defaults (16/32 MiB), below v7x's 64 MiB
            # physical per-TC VMEM; the 16 MiB block budget leaves headroom.
            vmem_limit_bytes=40 * 1024 * 1024,
        ),
    )(bias, weight, *fts_list)
    return out


def lf_op_att_ref(fts_list, weight, bias):
    """Pure-JAX reference of the same fusion (exact f32)."""
    fts = jnp.stack([f.astype(jnp.float32) for f in fts_list], axis=1)    # [N, L, D]
    w = weight.astype(jnp.float32)
    scores = jnp.sum(fts * w[0][None, None, :], axis=-1) + bias.astype(jnp.float32)[0]
    attw = jax.nn.softmax(scores, axis=-1)                                # [N, L]
    return jnp.sum(attw[:, :, None] * fts, axis=1).astype(fts_list[0].dtype)


if __name__ == "__main__":
    # Small shapes consistent with the module: layer_num layer outputs, each [N, hidden_dim].
    N, hidden_dim, layer_num = 16, 32, 3

    key = jax.random.PRNGKey(0)
    k_fts, k_w, k_b = jax.random.split(key, 3)

    fts_list = [
        jax.random.normal(jax.random.fold_in(k_fts, i), (N, hidden_dim), dtype=jnp.float32)
        for i in range(layer_num)
    ]
    # nn.Linear(hidden_dim, 1): weight [1, hidden_dim], bias [1].
    weight = jax.random.normal(k_w, (1, hidden_dim), dtype=jnp.float32) * 0.1
    bias = jax.random.normal(k_b, (1,), dtype=jnp.float32) * 0.1

    out = jax.block_until_ready(lf_op_att(fts_list, weight, bias))
    ref = lf_op_att_ref(fts_list, weight, bias)
    assert out.shape == (N, hidden_dim)
    assert jnp.allclose(out, ref, atol=1e-5, rtol=1e-5), "mismatch vs JAX reference"

    # Ragged N (not a multiple of 8): single full-extent block path.
    N2 = 37
    fts_list2 = [
        jax.random.normal(jax.random.fold_in(k_fts, 100 + i), (N2, hidden_dim),
                          dtype=jnp.float32)
        for i in range(layer_num)
    ]
    out2 = jax.block_until_ready(lf_op_att(fts_list2, weight, bias))
    ref2 = lf_op_att_ref(fts_list2, weight, bias)
    assert out2.shape == (N2, hidden_dim)
    assert jnp.allclose(out2, ref2, atol=1e-5, rtol=1e-5), "ragged-N mismatch"

    # Multi-tile grid with a partial (masked) last block: N=300, tile_n=128.
    N3 = 300
    fts_list3 = [
        jax.random.normal(jax.random.fold_in(k_fts, 200 + i), (N3, hidden_dim),
                          dtype=jnp.float32)
        for i in range(layer_num)
    ]
    out3 = jax.block_until_ready(lf_op_att(fts_list3, weight, bias, tile_n=128))
    ref3 = lf_op_att_ref(fts_list3, weight, bias)
    assert out3.shape == (N3, hidden_dim)
    assert jnp.allclose(out3, ref3, atol=1e-5, rtol=1e-5), "partial-block mismatch"

    # TODO(synk): other LAYER_FUSION_OPS primitives (concat/max/mean/sum/lstm) are not
    # specified in the prompt; only the attention ("att") fusion primitive is implemented.
    print("KERNEL_OK")
</pallas_src>

<mosaic_0001>
module attributes {stable_mosaic.version = 11 : i64} {
  func.func @kernel(%arg0: i32, %arg1: memref<1xf32, #tpu.memory_space<smem>>, %arg2: memref<1x32xf32, #tpu.memory_space<vmem>>, %arg3: memref<16x32xf32, #tpu.memory_space<vmem>>, %arg4: memref<16x32xf32, #tpu.memory_space<vmem>>, %arg5: memref<16x32xf32, #tpu.memory_space<vmem>>, %arg6: memref<16x32xf32, #tpu.memory_space<vmem>>) attributes {dimension_semantics = [#tpu.dimension_semantics<parallel>], iteration_bounds = array<i64: 1>, scalar_prefetch = 0 : i64, scratch_operands = 0 : i64, tpu.core_type = #tpu.core_type<tc>, window_params = [{transform_indices = @transform_0, window_bounds = array<i64: 1>}, {pipeline_mode = #tpu.pipeline_mode<synchronous>, transform_indices = @transform_1, window_bounds = array<i64: 1, 32>}, {transform_indices = @transform_2, window_bounds = array<i64: 16, 32>}, {transform_indices = @transform_3, window_bounds = array<i64: 16, 32>}, {transform_indices = @transform_4, window_bounds = array<i64: 16, 32>}, {transform_indices = @transform_5, window_bounds = array<i64: 16, 32>}]} {
    %c0 = arith.constant 0 : index
    %0 = memref.load %arg1[%c0] : memref<1xf32, #tpu.memory_space<smem>>
    %c0_0 = arith.constant 0 : index
    %c0_1 = arith.constant 0 : index
    %1 = vector.load %arg2[%c0_0, %c0_1] : memref<1x32xf32, #tpu.memory_space<vmem>>, vector<1x32xf32>
    %c0_2 = arith.constant 0 : index
    %c0_3 = arith.constant 0 : index
    %2 = vector.load %arg3[%c0_2, %c0_3] : memref<16x32xf32, #tpu.memory_space<vmem>>, vector<16x32xf32>
    %c0_4 = arith.constant 0 : index
    %c0_5 = arith.constant 0 : index
    %3 = vector.load %arg4[%c0_4, %c0_5] : memref<16x32xf32, #tpu.memory_space<vmem>>, vector<16x32xf32>
    %c0_6 = arith.constant 0 : index
    %c0_7 = arith.constant 0 : index
    %4 = vector.load %arg5[%c0_6, %c0_7] : memref<16x32xf32, #tpu.memory_space<vmem>>, vector<16x32xf32>
    %5 = vector.broadcast %1 : vector<1x32xf32> to vector<16x32xf32>
    %6 = arith.mulf %2, %5 : vector<16x32xf32>
    %cst = arith.constant dense<0.000000e+00> : vector<16xf32>
    %7 = vector.multi_reduction <add>, %6, %cst [1] : vector<16x32xf32> to vector<16xf32>
    %8 = vector.shape_cast %7 : vector<16xf32> to vector<16x1xf32>
    %9 = vector.broadcast %0 : f32 to vector<16x1xf32>
    %10 = arith.addf %8, %9 : vector<16x1xf32>
    %11 = vector.broadcast %1 : vector<1x32xf32> to vector<16x32xf32>
    %12 = arith.mulf %3, %11 : vector<16x32xf32>
    %cst_8 = arith.constant dense<0.000000e+00> : vector<16xf32>
    %13 = vector.multi_reduction <add>, %12, %cst_8 [1] : vector<16x32xf32> to vector<16xf32>
    %14 = vector.shape_cast %13 : vector<16xf32> to vector<16x1xf32>
    %15 = vector.broadcast %0 : f32 to vector<16x1xf32>
    %16 = arith.addf %14, %15 : vector<16x1xf32>
    %17 = vector.broadcast %1 : vector<1x32xf32> to vector<16x32xf32>
    %18 = arith.mulf %4, %17 : vector<16x32xf32>
    %cst_9 = arith.constant dense<0.000000e+00> : vector<16xf32>
    %19 = vector.multi_reduction <add>, %18, %cst_9 [1] : vector<16x32xf32> to vector<16xf32>
    %20 = vector.shape_cast %19 : vector<16xf32> to vector<16x1xf32>
    %21 = vector.broadcast %0 : f32 to vector<16x1xf32>
    %22 = arith.addf %20, %21 : vector<16x1xf32>
    %23 = arith.maximumf %10, %16 : vector<16x1xf32>
    %24 = arith.maximumf %23, %22 : vector<16x1xf32>
    %25 = arith.subf %10, %24 : vector<16x1xf32>
    %26 = math.exp %25 : vector<16x1xf32>
    %27 = arith.subf %16, %24 : vector<16x1xf32>
    %28 = math.exp %27 : vector<16x1xf32>
    %29 = arith.subf %22, %24 : vector<16x1xf32>
    %30 = math.exp %29 : vector<16x1xf32>
    %31 = arith.addf %26, %28 : vector<16x1xf32>
    %32 = arith.addf %31, %30 : vector<16x1xf32>
    %33 = tpu.reciprocal %32 : vector<16x1xf32> -> vector<16x1xf32>
    %34 = arith.mulf %26, %33 : vector<16x1xf32>
    %35 = vector.broadcast %34 : vector<16x1xf32> to vector<16x32xf32>
    %36 = arith.mulf %35, %2 : vector<16x32xf32>
    %37 = arith.mulf %28, %33 : vector<16x1xf32>
    %38 = vector.broadcast %37 : vector<16x1xf32> to vector<16x32xf32>
    %39 = arith.mulf %38, %3 : vector<16x32xf32>
    %40 = arith.addf %36, %39 : vector<16x32xf32>
    %41 = arith.mulf %30, %33 : vector<16x1xf32>
    %42 = vector.broadcast %41 : vector<16x1xf32> to vector<16x32xf32>
    %43 = arith.mulf %42, %4 : vector<16x32xf32>
    %44 = arith.addf %40, %43 : vector<16x32xf32>
    %c0_10 = arith.constant 0 : index
    %c0_11 = arith.constant 0 : index
    %45 = vector.load %arg6[%c0_10, %c0_11] : memref<16x32xf32, #tpu.memory_space<vmem>>, vector<16x32xf32>
    tpu.vector_store %arg6[%c0_10, %c0_11], %44 {strides = array<i32>} : memref<16x32xf32, #tpu.memory_space<vmem>>, vector<16x32xf32>,
    return
  }
  func.func @transform_0(%arg0: i32) -> i32 {
    %c0_i32 = arith.constant 0 : i32
    %c0_i32_0 = arith.constant 0 : i32
    return %c0_i32 : i32
  }
  func.func @transform_1(%arg0: i32) -> (i32, i32) {
    %c0_i32 = arith.constant 0 : i32
    %c0_i32_0 = arith.constant 0 : i32
    %c0_i32_1 = arith.constant 0 : i32
    return %c0_i32, %c0_i32_0 : i32, i32
  }
  func.func @transform_2(%arg0: i32) -> (i32, i32) {
    %c0_i32 = arith.constant 0 : i32
    %c0_i32_0 = arith.constant 0 : i32
    return %arg0, %c0_i32 : i32, i32
  }
  func.func @transform_3(%arg0: i32) -> (i32, i32) {
    %c0_i32 = arith.constant 0 : i32
    %c0_i32_0 = arith.constant 0 : i32
    return %arg0, %c0_i32 : i32, i32
  }
  func.func @transform_4(%arg0: i32) -> (i32, i32) {
    %c0_i32 = arith.constant 0 : i32
    %c0_i32_0 = arith.constant 0 : i32
    return %arg0, %c0_i32 : i32, i32
  }
  func.func @transform_5(%arg0: i32) -> (i32, i32) {
    %c0_i32 = arith.constant 0 : i32
    %c0_i32_0 = arith.constant 0 : i32
    return %arg0, %c0_i32 : i32, i32
  }
}

</mosaic_0001>

<bundles_post_ra>
// kernel: tpu_custom_call.1
= control target key start
LH: loop header
LB: loop body
LE: loop exit
PB: predicated region body
PF: predicated region fallthrough
CT: control target
= control target key end

     0   :  { %11 = vsyncpa [#allocation4], 0  ;;  %s427_s0 = inlined_call_operand.<no memory space> [shape: f32[1], index: 0, kind: input, shape index: {}]   ;;  %s428_s1 = inlined_call_operand.vmem [shape: f32[1,32], index: 1, kind: input, shape index: {}]   ;;  %s429_s2 = inlined_call_operand.hbm [shape: f32[16,32], index: 2, kind: input, shape index: {}]   ;;  %s430_s3 = inlined_call_operand.hbm [shape: f32[16,32], index: 3, kind: input, shape index: {}]   ;;  %s431_s4 = inlined_call_operand.hbm [shape: f32[16,32], index: 4, kind: input, shape index: {}]   ;;  %s432_s5 = inlined_call_operand.hbm [shape: f32[16,32], index: 5, kind: output, shape index: {}]  }
   0x1   :  { %12 = vsyncpa [#allocation7], 0 }
   0x2   :  { %13 = vsyncpa [#allocation5], 0  ;;  %s35_s20 = sshll.u32 %s430_s3, 4  ;;  %s329_s21 = smov [#allocation6]   ;;  %s36_s20 = int_to_ptr.hbm [resolvable:$true] %s35_s20 }
   0x3   :  { %s37_s22 = sshll.u32 %s329_s21, 4  ;;  %s22_s25 = sshll.u32 %s429_s2, 4  ;;  %s38_s22 = int_to_ptr.vmem [resolvable:$true] %s37_s22  ;;  %s23_s25 = int_to_ptr.hbm [resolvable:$true] %s22_s25 }
   0x4   :  { %s330_s26 = smov 128   ;;  %s331_s27 = smov 8  }
   0x5   :  { %43 = dma.hbm_to_vmem [thread:$0]  %s36_s20, 256, %s38_s22, [#allocation7], %s330_s26, %s330_s26, %s331_s27  }
   0x6   :  { %s332_s28 = smov [#allocation3]   ;;  %s48_s3 = sshll.u32 %s431_s4, 4  ;;  %s49_s3 = int_to_ptr.hbm [resolvable:$true] %s48_s3 }
   0x7   :  { %s24_s29 = sshll.u32 %s332_s28, 4  ;;  %s333_s2 = smov [#allocation8]   ;;  %s25_s29 = int_to_ptr.vmem [resolvable:$true] %s24_s29 }
   0x8   :  { %30 = dma.hbm_to_vmem [thread:$0]  %s23_s25, 256, %s25_s29, [#allocation4], %s330_s26, %s330_s26, %s331_s27  }
   0x9   :  { %s50_s7 = sshll.u32 %s333_s2, 4  ;;  %s51_s7 = int_to_ptr.vmem [resolvable:$true] %s50_s7 }
   0xa   :  { %56 = dma.hbm_to_vmem [thread:$0]  %s49_s3, 256, %s51_s7, [#allocation7], %s330_s26, %s330_s26, %s331_s27  }
   0xb   :  { %323 = dma.done.wait [#allocation4], 256  }
   0xc   :  { %324 = vsyncadd [#allocation4], 4294967040 }
   0xd   :  { %325 = dma.done.wait [#allocation7], 512  }
   0xe   :  { %326 = vsyncadd [#allocation7], 4294966784  ;;  %v383_v0 = vld [vmem:[#allocation6] sm:$0xff]  ;;  %v210_v1 = vld [vmem:[%s428_s1] ss:$0 sm:$0xff]  ;;  %vm82_vm0 = vcmask 261120   ;;  %v89_v19 = vstv %s427_s0 }
   0xf   :  { %v388_v2 = vld [vmem:[#allocation3] sm:$0xff]  ;;  %v92_v4 = vmul.f32 %v210_v1, %v383_v0  ;;  %v395_v7 = vld [vmem:[#allocation6 + $0x8] sm:$0xff]  ;;  %v397_v8 = vld [vmem:[#allocation3 + $0x8] sm:$0xff]  ;;  %s334_s0 = smov [#allocation9]   ;;  %s190_s13 = sshll.u32 %s432_s5, 4  ;;  %s191_s13 = int_to_ptr.hbm [resolvable:$true] %s190_s13 }
  0x10   :  { %v390_v3 = vld [vmem:[#allocation8] sm:$0xff]  ;;  %v80_v5 = vmul.f32 %v210_v1, %v388_v2  ;;  %v402_v12 = vld [vmem:[#allocation8 + $0x8] sm:$0xff]  ;;  %v93_v13 = vmul.f32 %v210_v1, %v395_v7  ;;  %v81_v14 = vmul.f32 %v210_v1, %v397_v8  ;;  %s188_s10 = sshll.u32 %s334_s0, 4  ;;  %s189_s10 = int_to_ptr.vmem [resolvable:$true] %s188_s10 }
  0x11   :  { %v102_v6 = vmul.f32 %v210_v1, %v390_v3  ;;  %v94_v9 = vsel %vm82_vm0, %v92_v4, 0.0  ;;  %v103_v15 = vmul.f32 %v210_v1, %v402_v12 }
  0x12   :  { %v83_v10 = vsel %vm82_vm0, %v80_v5, 0.0  ;;  %95 = vadd.xlane.f32.xlu1 %v94_v9  ;;  %v97_v16 = vsel %vm82_vm0, %v93_v13, 0.0  ;;  %v86_v17 = vsel %vm82_vm0, %v81_v14, 0.0 }
  0x13   :  { %v104_v11 = vsel %vm82_vm0, %v102_v6, 0.0  ;;  %84 = vadd.xlane.f32.xlu0 %v83_v10  ;;  %v107_v18 = vsel %vm82_vm0, %v103_v15, 0.0 }
  0x14   :  { %105 = vadd.xlane.f32.xlu2 %v104_v11 }
  0x1a   :  { %98 = vadd.xlane.f32.xlu1 %v97_v16 }
  0x1b   :  { %87 = vadd.xlane.f32.xlu0 %v86_v17 }
  0x1c   :  { %108 = vadd.xlane.f32.xlu2 %v107_v18 }
  0x85   :  { %v96_v20 = vpop.xlane.xlu1 %95 }
  0x86   :  { %v85_v21 = vpop.xlane.xlu0 %84  ;;  %v100_v22 = vadd.f32 %v96_v20, %v89_v19 }
  0x87   :  { %v90_v23 = vadd.f32 %v89_v19, %v85_v21  ;;  %v106_v24 = vpop.xlane.xlu2 %105 }
  0x88   :  { %v110_v25 = vadd.f32 %v106_v24, %v89_v19 }
  0x89   :  { %v112_v26 = vmax.f32 %v90_v23, %v100_v22 }
  0x8b   :  { %v114_v27 = vmax.f32 %v112_v26, %v110_v25 }
  0x8d   :  { %v116_v28 = vsub.f32 %v90_v23, %v114_v27  ;;  %v122_v29 = vsub.f32 %v100_v22, %v114_v27  ;;  %v128_v30 = vsub.f32 %v110_v25, %v114_v27  ;;  %v99_v31 = vpop.xlane.xlu1 %98 }
  0x8e   :  { %v88_v32 = vpop.xlane.xlu0 %87  ;;  %v101_v35 = vadd.f32 %v99_v31, %v89_v19 }
  0x8f   :  { %v118_v33 = vmul.f32 1.442695, %v116_v28  ;;  %v124_v34 = vmul.f32 1.442695, %v122_v29  ;;  %v109_v36 = vpop.xlane.xlu2 %108  ;;  %v130_v37 = vmul.f32 1.442695, %v128_v30  ;;  %v91_v38 = vadd.f32 %v89_v19, %v88_v32 }
  0x90   :  { %v111_v39 = vadd.f32 %v109_v36, %v89_v19 }
  0x91   :  { %211 = vpow2.f32 %v118_v33  ;;  %v113_v40 = vmax.f32 %v91_v38, %v101_v35 }
  0x92   :  { %213 = vpow2.f32 %v124_v34 }
  0x93   :  { %215 = vpow2.f32 %v130_v37  ;;  %v115_v41 = vmax.f32 %v113_v40, %v111_v39 }
  0x95   :  { %v117_v42 = vsub.f32 %v91_v38, %v115_v41  ;;  %v123_v43 = vsub.f32 %v101_v35, %v115_v41  ;;  %v129_v44 = vsub.f32 %v111_v39, %v115_v41 }
  0x97   :  { %v212_v45 = vpop.eup %211  ;;  %v120_v47 = vmul.f32 1.442695, %v117_v42  ;;  %v126_v48 = vmul.f32 1.442695, %v123_v43  ;;  %v132_v49 = vmul.f32 1.442695, %v129_v44 }
  0x98   :  { %v214_v46 = vpop.eup %213 }
  0x99   :  { %v134_v50 = vadd.f32 %v214_v46, %v212_v45  ;;  %v216_v51 = vpop.eup %215  ;;  %217 = vpow2.f32 %v120_v47 }
  0x9a   :  { %219 = vpow2.f32 %v126_v48 }
  0x9b   :  { %v136_v52 = vadd.f32 %v216_v51, %v134_v50  ;;  %221 = vpow2.f32 %v132_v49 }
  0x9d   :  { %223 = vrcp.f32 %v136_v52  ;;  %v149_v61 = vand.u32 2147483648, %v136_v52  ;;  %v147_v63 = vand.u32 2147483647, %v136_v52  ;;  %vm143_vm2 = vweird.f32 %v136_v52 }
  0x9f   :  { %v218_v53 = vpop.eup %217  ;;  %v150_v4 = vor.u32 1.1754944e-38, %v149_v61  ;;  %vm148_vm4 = vcmp.eq.f32.partialorder %v147_v63, 8.507059e+37 }
  0xa0   :  { %v220_v54 = vpop.eup %219 }
  0xa1   :  { %v222_v55 = vpop.eup %221  ;;  %v135_v56 = vadd.f32 %v220_v54, %v218_v53 }
  0xa3   :  { %v224_v57 = vpop.eup %223  ;;  %v137_v59 = vadd.f32 %v222_v55, %v135_v56 }
  0xa4   :  { %v139_v58 = vmul.f32 %v224_v57, %v136_v52  ;;  %vm144_vm1 = vweird.f32 %v224_v57 }
  0xa5   :  { %225 = vrcp.f32 %v137_v59  ;;  %vm145_vm3 = vmor %vm143_vm2, %vm144_vm1  ;;  %v163_v16 = vand.u32 2147483648, %v137_v59  ;;  %v161_v20 = vand.u32 2147483647, %v137_v59  ;;  %vm157_vm6 = vweird.f32 %v137_v59 }
  0xa6   :  { %v140_v60 = vsub.f32 1.0, %v139_v58 }
  0xa7   :  { %v164_v24 = vor.u32 1.1754944e-38, %v163_v16  ;;  %vm162_vm8 = vcmp.eq.f32.partialorder %v161_v20, 8.507059e+37 }
  0xa8   :  { %v141_v62 = vmul.f32 %v224_v57, %v140_v60 }
  0xaa   :  { %v142_v1 = vadd.f32 %v224_v57, %v141_v62 }
  0xab   :  { %v226_v5 = vpop.eup %225 }
  0xac   :  { %v146_v6 = vsel %vm145_vm3, %v224_v57, %v142_v1  ;;  %v153_v10 = vmul.f32 %v226_v5, %v137_v59  ;;  %vm158_vm5 = vweird.f32 %v226_v5 }
  0xad   :  { %v151_v9 = vsel %vm148_vm4, %v150_v4, %v146_v6  ;;  %vm159_vm7 = vmor %vm157_vm6, %vm158_vm5 }
  0xae   :  { %v166_v11 = vmul.f32 %v212_v45, %v151_v9  ;;  %v170_v13 = vmul.f32 %v214_v46, %v151_v9  ;;  %v176_v14 = vmul.f32 %v216_v51, %v151_v9  ;;  %v154_v15 = vsub.f32 1.0, %v153_v10 }
  0xb0   :  { %v168_v17 = vmul.f32 %v166_v11, %v388_v2  ;;  %v172_v18 = vmul.f32 %v170_v13, %v383_v0  ;;  %v155_v19 = vmul.f32 %v226_v5, %v154_v15  ;;  %v178_v22 = vmul.f32 %v176_v14, %v390_v3 }
  0xb2   :  { %v174_v21 = vadd.f32 %v172_v18, %v168_v17  ;;  %v156_v23 = vadd.f32 %v226_v5, %v155_v19 }
  0xb4   :  { %v180_v25 = vadd.f32 %v178_v22, %v174_v21  ;;  %v160_v26 = vsel %vm159_vm7, %v226_v5, %v156_v23 }
  0xb5   :  { %v165_v27 = vsel %vm162_vm8, %v164_v24, %v160_v26 }
  0xb6   :  { %182 = vst.msk [vmem:[#allocation9] sm:$0xff] %vm82_vm0, %v180_v25  ;;  %v167_v28 = vmul.f32 %v218_v53, %v165_v27  ;;  %v171_v2 = vmul.f32 %v220_v54, %v165_v27  ;;  %v177_v29 = vmul.f32 %v222_v55, %v165_v27 }
  0xb8   :  { %v169_v0 = vmul.f32 %v167_v28, %v397_v8  ;;  %v173_v30 = vmul.f32 %v171_v2, %v395_v7  ;;  %v179_v31 = vmul.f32 %v177_v29, %v402_v12 }
  0xba   :  { %v175_v3 = vadd.f32 %v173_v30, %v169_v0 }
  0xbc   :  { %v181_v32 = vadd.f32 %v179_v31, %v175_v3 }
  0xbe   :  { %183 = vst.msk [vmem:[#allocation9 + $0x8] sm:$0xff] %vm82_vm0, %v181_v32 }
  0xbf   :  { %196 = dma.vmem_to_hbm [thread:$0]  %s189_s10, 256, %s191_s13, [#allocation5], %s330_s26, %s330_s26, %s331_s27  }
  0xc0   :  { %327 = dma.done.wait [#allocation5], 256  }
  0xc1   :  { %328 = vsyncadd [#allocation5], 4294967040 }
  0xc2   :  { %201 = vsyncpa [#allocation4], 1 }
  0xc3   :  { %202 = vsyncpa [#allocation7], 1 }
  0xc4   :  { %203 = vsyncpa [#allocation5], 1 }

</bundles_post_ra>
